<compile_context>
chip_gen: v7x
topology: tpu7x:2x2x1
jax: 0.10.0
libtpu: 0.0.40
codegen_flags: <defaults>
</compile_context>

<pallas_src>
import functools

import jax
import jax.numpy as jnp
from jax.experimental import pallas as pl
from jax.experimental.pallas import tpu as pltpu


# ----------------------------------------------------------------------------- kernel factory


def _make_dense_block_kernel(activation, use_residual, dropout_rate, multi_k, compute_dtype):
    """Fused DenseBlock kernel with all static config baked in."""

    def kernel(*refs):
        idx = 0
        x_ref = refs[idx]; idx += 1            # (tm, tk) pre-activation input tile
        w_ref = refs[idx]; idx += 1            # (tk, tn) weight tile
        scale_ref = refs[idx]; idx += 1        # (1, tn)  fused BN scale (f32)
        bias_ref = refs[idx]; idx += 1         # (1, tn)  fused BN bias / linear bias (f32)
        res_ref = None
        if use_residual:
            res_ref = refs[idx]; idx += 1      # (tm, tn) residual tile (= raw inputs)
        seed_ref = None
        if dropout_rate > 0.0:
            seed_ref = refs[idx]; idx += 1     # SMEM int32[1]
        o_ref = refs[idx]; idx += 1            # (tm, tn) output tile
        acc_ref = refs[idx] if multi_k else None   # (tm, tn) f32 accumulator (only when K tiled)

        # Hoist every program_id / num_programs / SMEM scalar read to the kernel top level.
        # (Binding them inside a pl.when branch is what broke the previous version.)
        if dropout_rate > 0.0:
            tm_, tn_ = o_ref.shape
            row0 = pl.program_id(0) * tm_      # global row offset of this output tile
            col0 = pl.program_id(1) * tn_      # global col offset of this output tile
            seed = seed_ref[0]

        # activation(inputs) fused with the matmul operand; native dtype (no f32 upcast).
        xa = activation(x_ref[...])
        w = w_ref[...]
        if compute_dtype is not None:
            xa = xa.astype(compute_dtype)
            w = w.astype(compute_dtype)
        partial = jnp.dot(xa, w, preferred_element_type=jnp.float32)

        def epilogue(acc):
            # Fused BatchNorm affine (scale=1, bias=linear bias when batch_norm=False).
            y = acc * scale_ref[...] + bias_ref[...]

            if dropout_rate > 0.0:
                # Counter-based dropout mask: lowbias32 hash of global (row, col) + seed.
                rows = (jax.lax.broadcasted_iota(jnp.int32, y.shape, 0) + row0).astype(jnp.uint32)
                cols = (jax.lax.broadcasted_iota(jnp.int32, y.shape, 1) + col0).astype(jnp.uint32)
                h = rows * jnp.uint32(0x9E3779B1) + cols * jnp.uint32(0x85EBCA77)
                h = h ^ seed.astype(jnp.uint32)
                h = h ^ (h >> 16)
                h = h * jnp.uint32(0x7FEB352D)
                h = h ^ (h >> 15)
                h = h * jnp.uint32(0x846CA68B)
                h = h ^ (h >> 16)
                r = (h & jnp.uint32(0x00FFFFFF)).astype(jnp.int32)
                thresh = jnp.int32(min(int(dropout_rate * float(1 << 24)), (1 << 24) - 1))
                keep = (r >= thresh).astype(jnp.float32)
                y = y * keep * jnp.float32(1.0 / (1.0 - dropout_rate))

            if use_residual:
                y = y + res_ref[...].astype(jnp.float32)

            o_ref[...] = y.astype(o_ref.dtype)

        if multi_k:
            k = pl.program_id(2)
            last_k = pl.num_programs(2) - 1

            @pl.when(k == 0)
            def _init():
                acc_ref[...] = jnp.zeros_like(acc_ref)

            acc_ref[...] += partial

            @pl.when(k == last_k)
            def _finalize():
                epilogue(acc_ref[...])
        else:
            # Single K step: no accumulator scratch, no init/finalize pl.when needed.
            epilogue(partial)

    return kernel


# ----------------------------------------------------------------------------- helpers


def fold_batch_norm(gamma, beta, running_mean, running_var, eps=1e-5):
    """Eval-mode BatchNorm1d -> per-feature (scale, bias)."""
    scale = gamma / jnp.sqrt(running_var + eps)
    bias = beta - running_mean * scale
    return scale.astype(jnp.float32), bias.astype(jnp.float32)


def _round_up(x, m):
    return ((x + m - 1) // m) * m


def _largest_aligned_divisor(dim, align, cap):
    """Largest multiple of `align` that divides `dim` and is <= cap; falls back to `dim`."""
    t = (min(cap, dim) // align) * align
    while t >= align:
        if dim % t == 0:
            return t
        t -= align
    return dim  # full-dim tile is always legal under the (8,128) rule


# ----------------------------------------------------------------------------- wrapper


def dense_block_pallas(inputs, w, scale, bias, *, activation, flatten=False,
                       residual=False, dropout=0.0, dropout_seed=0, compute_dtype=None):
    """Fused DenseBlock forward.

    inputs : [B, ...]      (flattened to [M, K] if flatten=True; else already [M, K])
    w      : [K, N]        (transpose of the PyTorch Linear weight [N, K])
    scale  : f32[N]        (BN gamma/sqrt(var+eps); ones if batch_norm=False)
    bias   : f32[N]        (BN beta - mean*scale;   Linear bias if batch_norm=False)
    """
    x = inputs
    if flatten:
        x = x.reshape(x.shape[0], -1)
    M, K = x.shape
    Kw, N = w.shape
    assert K == Kw, f"weight in_features {Kw} != input features {K}"
    if residual:
        assert N == K, "residual connection requires n_units == input feature dim"

    out_dtype = x.dtype

    # ---- pad K / N to multiples of 128 (lane-dense tiles, unmasked stores, no VMEM blow-up)
    Kp = _round_up(K, 128)
    Np = _round_up(N, 128)
    xp = x if Kp == K else jnp.pad(x, ((0, 0), (0, Kp - K)))
    wp = w if (Kp == K and Np == N) else jnp.pad(w, ((0, Kp - K), (0, Np - N)))
    scale_p = scale if Np == N else jnp.pad(scale, (0, Np - N), constant_values=1.0)
    bias_p = bias if Np == N else jnp.pad(bias, (0, Np - N))

    in_bytes = xp.dtype.itemsize
    w_bytes = wp.dtype.itemsize
    out_bytes = jnp.dtype(out_dtype).itemsize

    # ---- per-generation VMEM budget (v7x: 64 MiB physical; v5e/v6e: 128 MiB)
    try:
        vmem_cap = int(pltpu.get_tpu_info().vmem_capacity_bytes)
    except Exception:
        vmem_cap = 64 * 1024 * 1024   # conservative (v7x)
    budget = max(min(vmem_cap // 2, 32 * 1024 * 1024), 8 * 1024 * 1024)

    def working_set(tm, tn, tk, multi_k):
        ws = 2 * (tm * tk * in_bytes + tk * tn * w_bytes)   # x, w (double-buffered)
        ws += 2 * 2 * tn * 4                                # scale, bias (double-buffered)
        ws += 2 * tm * tn * out_bytes                       # output (double-buffered)
        if residual:
            ws += 2 * tm * tn * in_bytes                    # residual (account, don't shrink matmul)
        if multi_k:
            ws += tm * tn * 4                               # f32 accumulator scratch
        return ws

    tm_cap, tn_cap, tk_cap = 512, 1024, 2048
    tm = M if M % 8 != 0 else _largest_aligned_divisor(M, 8, tm_cap)
    while True:
        tn = _largest_aligned_divisor(Np, 128, tn_cap)
        tk = _largest_aligned_divisor(Kp, 128, tk_cap)
        multi_k = (Kp // tk) > 1
        if working_set(tm, tn, tk, multi_k) <= budget:
            break
        if tk_cap > 128 and tk_cap >= tn_cap:
            tk_cap //= 2
        elif tn_cap > 128:
            tn_cap //= 2
        elif tm_cap > 8 and tm > 8:
            tm_cap //= 2
            tm = M if M % 8 != 0 else _largest_aligned_divisor(M, 8, tm_cap)
        else:
            break  # accept; vmem_limit_bytes below is raised to compensate

    # v7x has 2 TensorCores: make sure at least one "parallel" axis has >= 2 tiles when the
    # grid would otherwise collapse to a single program (near-no-op on single-TC v5e/v6e).
    if (M // tm) * (Np // tn) == 1 and Np >= 256:
        half = Np // 2
        tn = half if half % 128 == 0 else 128

    kt = Kp // tk
    multi_k = kt > 1
    mt, nt = M // tm, Np // tn

    scale2d = scale_p.reshape(1, Np).astype(jnp.float32)
    bias2d = bias_p.reshape(1, Np).astype(jnp.float32)

    if multi_k:
        grid = (mt, nt, kt)
        x_spec = pl.BlockSpec((tm, tk), lambda i, j, k: (i, k))
        w_spec = pl.BlockSpec((tk, tn), lambda i, j, k: (k, j))
        sb_spec = pl.BlockSpec((1, tn), lambda i, j, k: (0, j))
        out_spec = pl.BlockSpec((tm, tn), lambda i, j, k: (i, j))
        res_spec = pl.BlockSpec((tm, tn), lambda i, j, k: (i, j))
        scratch = [pltpu.VMEM((tm, tn), jnp.float32)]
        semantics = ("parallel", "parallel", "arbitrary")
    else:
        grid = (mt, nt)
        x_spec = pl.BlockSpec((tm, tk), lambda i, j: (i, 0))
        w_spec = pl.BlockSpec((tk, tn), lambda i, j: (0, j))
        sb_spec = pl.BlockSpec((1, tn), lambda i, j: (0, j))
        out_spec = pl.BlockSpec((tm, tn), lambda i, j: (i, j))
        res_spec = pl.BlockSpec((tm, tn), lambda i, j: (i, j))
        scratch = []
        semantics = ("parallel", "parallel")

    in_specs = [x_spec, w_spec, sb_spec, sb_spec]
    operands = [xp, wp, scale2d, bias2d]
    if residual:
        in_specs.append(res_spec)
        operands.append(xp)
    if dropout > 0.0:
        in_specs.append(pl.BlockSpec(memory_space=pltpu.MemorySpace.SMEM))
        operands.append(jnp.asarray([dropout_seed], dtype=jnp.int32))

    kernel = _make_dense_block_kernel(activation, residual, float(dropout), multi_k,
                                      compute_dtype)

    ws = working_set(tm, tn, tk, multi_k)
    vmem_limit = int(min(max(ws + ws // 2, 32 * 1024 * 1024), 48 * 1024 * 1024))

    out = pl.pallas_call(
        kernel,
        out_shape=jax.ShapeDtypeStruct((M, Np), out_dtype),
        grid_spec=pltpu.PrefetchScalarGridSpec(
            num_scalar_prefetch=0,
            grid=grid,
            in_specs=in_specs,
            out_specs=out_spec,
            scratch_shapes=scratch),
        compiler_params=pltpu.CompilerParams(
            dimension_semantics=semantics,
            vmem_limit_bytes=vmem_limit),
    )(*operands)

    if Np != N:
        out = out[:, :N]
    return out


# ----------------------------------------------------------------------------- reference


def dense_block_ref(x, w, scale, bias, *, activation, flatten=False, residual=False):
    cur = activation(x.astype(jnp.float32))
    if flatten:
        cur = cur.reshape(cur.shape[0], -1)
    cur = jnp.dot(cur, w.astype(jnp.float32), preferred_element_type=jnp.float32)
    cur = cur * scale.astype(jnp.float32)[None, :] + bias.astype(jnp.float32)[None, :]
    if residual:
        xr = x.reshape(x.shape[0], -1) if flatten else x
        cur = xr.astype(jnp.float32) + cur
    return cur.astype(x.dtype)


# ----------------------------------------------------------------------------- test


if __name__ == "__main__":
    key = jax.random.PRNGKey(0)
    ks = jax.random.split(key, 14)
    act = functools.partial(jax.nn.gelu, approximate=True)

    def check(name, out, ref, atol=2e-2, rtol=2e-2):
        assert out.shape == ref.shape and out.dtype == ref.dtype, name
        err = float(jnp.max(jnp.abs(out.astype(jnp.float32) - ref.astype(jnp.float32))))
        assert jnp.allclose(out.astype(jnp.float32), ref.astype(jnp.float32),
                            atol=atol, rtol=rtol), f"{name}: max abs err {err}"

    B = 8

    # --- Case 1: flatten=True, batch_norm=True, no residual, no dropout ----------------
    x_dim, ch_dim, n_units = 32, 16, 256
    K = x_dim * ch_dim
    x3 = jax.random.normal(ks[0], (B, x_dim, ch_dim), dtype=jnp.float32)
    w1 = jax.random.normal(ks[1], (K, n_units), dtype=jnp.float32) * (2.0 / K) ** 0.5
    gamma = jax.random.uniform(ks[2], (n_units,), minval=0.5, maxval=1.5)
    beta = jax.random.normal(ks[3], (n_units,)) * 0.1
    rmean = jax.random.normal(ks[4], (n_units,)) * 0.1
    rvar = jax.random.uniform(ks[5], (n_units,), minval=0.5, maxval=1.5)
    scale1, bias1 = fold_batch_norm(gamma, beta, rmean, rvar)

    out1 = jax.block_until_ready(
        dense_block_pallas(x3, w1, scale1, bias1, activation=act, flatten=True))
    ref1 = dense_block_ref(x3, w1, scale1, bias1, activation=act, flatten=True)
    check("flatten+bn", out1, ref1)

    # --- Case 2: residual=True, batch_norm=True, flatten=False -------------------------
    F = 256
    x2 = jax.random.normal(ks[6], (B, F), dtype=jnp.float32)
    w2 = jax.random.normal(ks[7], (F, F), dtype=jnp.float32) * (2.0 / F) ** 0.5
    scale2, bias2 = fold_batch_norm(gamma[:F], beta[:F], rmean[:F], rvar[:F])

    out2 = jax.block_until_ready(
        dense_block_pallas(x2, w2, scale2, bias2, activation=act, residual=True))
    ref2 = dense_block_ref(x2, w2, scale2, bias2, activation=act, residual=True)
    check("residual+bn", out2, ref2)

    # --- Case 3: dropout=0.5, batch_norm=False (Linear has bias), no residual ----------
    n3 = 128
    x4 = jax.random.normal(ks[8], (B, F), dtype=jnp.float32)
    w3 = jax.random.normal(ks[9], (F, n3), dtype=jnp.float32) * (2.0 / F) ** 0.5
    lin_bias = jax.random.normal(ks[10], (n3,)) * 0.1
    scale3 = jnp.ones((n3,), jnp.float32)

    out3 = jax.block_until_ready(
        dense_block_pallas(x4, w3, scale3, lin_bias, activation=act,
                           dropout=0.5, dropout_seed=1234))
    assert out3.shape == (B, n3)
    assert bool(jnp.all(jnp.isfinite(out3)))
    zero_frac = float(jnp.mean((out3 == 0.0).astype(jnp.float32)))
    assert 0.3 < zero_frac < 0.7, f"dropout zero fraction {zero_frac} not ~0.5"

    # --- Case 4: bf16 operands (native-dtype MXU path) + ragged N (padding path) -------
    K4, n4 = 256, 200
    x5 = jax.random.normal(ks[11], (B, K4), dtype=jnp.float32).astype(jnp.bfloat16)
    w4 = (jax.random.normal(ks[12], (K4, n4), dtype=jnp.float32)
          * (2.0 / K4) ** 0.5).astype(jnp.bfloat16)
    scale4, bias4 = fold_batch_norm(gamma[:n4], beta[:n4], rmean[:n4], rvar[:n4])
    out4 = jax.block_until_ready(
        dense_block_pallas(x5, w4, scale4, bias4, activation=act))
    ref4 = dense_block_ref(x5, w4, scale4, bias4, activation=act)
    check("bf16+raggedN", out4, ref4, atol=1e-1, rtol=1e-1)

    # --- Case 5: large K (forces K-tiled accumulator path) -----------------------------
    K5, n5 = 4096, 256
    x6 = jax.random.normal(ks[13], (B, K5), dtype=jnp.float32)
    w5 = jax.random.normal(ks[7], (K5, n5), dtype=jnp.float32) * (2.0 / K5) ** 0.5
    scale5, bias5 = fold_batch_norm(gamma, beta, rmean, rvar)
    out5 = jax.block_until_ready(
        dense_block_pallas(x6, w5, scale5, bias5, activation=act))
    ref5 = dense_block_ref(x6, w5, scale5, bias5, activation=act)
    check("multi-k", out5, ref5)

    print("KERNEL_OK")
</pallas_src>

<mosaic_0001>
module attributes {stable_mosaic.version = 11 : i64} {
  func.func @kernel(%arg0: i32, %arg1: i32, %arg2: memref<8x512xf32, #tpu.memory_space<vmem>>, %arg3: memref<512x128xf32, #tpu.memory_space<vmem>>, %arg4: memref<1x128xf32, #tpu.memory_space<vmem>>, %arg5: memref<1x128xf32, #tpu.memory_space<vmem>>, %arg6: memref<8x128xf32, #tpu.memory_space<vmem>>) attributes {dimension_semantics = [#tpu.dimension_semantics<parallel>, #tpu.dimension_semantics<parallel>], iteration_bounds = array<i64: 1, 2>, scalar_prefetch = 0 : i64, scratch_operands = 0 : i64, tpu.core_type = #tpu.core_type<tc>, window_params = [{transform_indices = @transform_0, window_bounds = array<i64: 8, 512>}, {transform_indices = @transform_1, window_bounds = array<i64: 512, 128>}, {transform_indices = @transform_2, window_bounds = array<i64: 1, 128>}, {transform_indices = @transform_3, window_bounds = array<i64: 1, 128>}, {transform_indices = @transform_4, window_bounds = array<i64: 8, 128>}]} {
    %c0 = arith.constant 0 : index
    %c0_0 = arith.constant 0 : index
    %0 = vector.load %arg2[%c0, %c0_0] : memref<8x512xf32, #tpu.memory_space<vmem>>, vector<8x512xf32>
    %1 = arith.mulf %0, %0 : vector<8x512xf32>
    %2 = arith.mulf %0, %1 : vector<8x512xf32>
    %cst = arith.constant 4.471500e-02 : f32
    %3 = vector.broadcast %cst : f32 to vector<8x512xf32>
    %4 = arith.mulf %3, %2 : vector<8x512xf32>
    %5 = arith.addf %0, %4 : vector<8x512xf32>
    %cst_1 = arith.constant 0.797884583 : f32
    %6 = vector.broadcast %cst_1 : f32 to vector<8x512xf32>
    %7 = arith.mulf %6, %5 : vector<8x512xf32>
    %8 = math.tanh %7 : vector<8x512xf32>
    %cst_2 = arith.constant 1.000000e+00 : f32
    %9 = vector.broadcast %cst_2 : f32 to vector<8x512xf32>
    %10 = arith.addf %9, %8 : vector<8x512xf32>
    %cst_3 = arith.constant 5.000000e-01 : f32
    %11 = vector.broadcast %cst_3 : f32 to vector<8x512xf32>
    %12 = arith.mulf %11, %10 : vector<8x512xf32>
    %13 = arith.mulf %0, %12 : vector<8x512xf32>
    %c0_4 = arith.constant 0 : index
    %c0_5 = arith.constant 0 : index
    %14 = vector.load %arg3[%c0_4, %c0_5] : memref<512x128xf32, #tpu.memory_space<vmem>>, vector<512x128xf32>
    %cst_6 = arith.constant dense<0.000000e+00> : vector<8x128xf32>
    %15 = tpu.matmul %13, %14, %cst_6 {dimension_numbers = #tpu.dot_dimension_numbers<[1], [0], [0], [1], [0, 0, 1, 1], [], []>} : vector<8x512xf32>, vector<512x128xf32>, vector<8x128xf32> -> vector<8x128xf32>
    %c0_7 = arith.constant 0 : index
    %c0_8 = arith.constant 0 : index
    %16 = vector.load %arg4[%c0_7, %c0_8] : memref<1x128xf32, #tpu.memory_space<vmem>>, vector<1x128xf32>
    %17 = vector.broadcast %16 : vector<1x128xf32> to vector<8x128xf32>
    %18 = arith.mulf %15, %17 : vector<8x128xf32>
    %c0_9 = arith.constant 0 : index
    %c0_10 = arith.constant 0 : index
    %19 = vector.load %arg5[%c0_9, %c0_10] : memref<1x128xf32, #tpu.memory_space<vmem>>, vector<1x128xf32>
    %20 = vector.broadcast %19 : vector<1x128xf32> to vector<8x128xf32>
    %21 = arith.addf %18, %20 : vector<8x128xf32>
    %c0_11 = arith.constant 0 : index
    %c0_12 = arith.constant 0 : index
    %22 = vector.load %arg6[%c0_11, %c0_12] : memref<8x128xf32, #tpu.memory_space<vmem>>, vector<8x128xf32>
    tpu.vector_store %arg6[%c0_11, %c0_12], %21 {strides = array<i32>} : memref<8x128xf32, #tpu.memory_space<vmem>>, vector<8x128xf32>,
    return
  }
  func.func @transform_0(%arg0: i32, %arg1: i32) -> (i32, i32) {
    %c0_i32 = arith.constant 0 : i32
    %c0_i32_0 = arith.constant 0 : i32
    return %arg0, %c0_i32 : i32, i32
  }
  func.func @transform_1(%arg0: i32, %arg1: i32) -> (i32, i32) {
    %c0_i32 = arith.constant 0 : i32
    %c0_i32_0 = arith.constant 0 : i32
    return %c0_i32, %arg1 : i32, i32
  }
  func.func @transform_2(%arg0: i32, %arg1: i32) -> (i32, i32) {
    %c0_i32 = arith.constant 0 : i32
    %c0_i32_0 = arith.constant 0 : i32
    return %c0_i32, %arg1 : i32, i32
  }
  func.func @transform_3(%arg0: i32, %arg1: i32) -> (i32, i32) {
    %c0_i32 = arith.constant 0 : i32
    %c0_i32_0 = arith.constant 0 : i32
    return %c0_i32, %arg1 : i32, i32
  }
  func.func @transform_4(%arg0: i32, %arg1: i32) -> (i32, i32) {
    %c0_i32 = arith.constant 0 : i32
    return %arg0, %arg1 : i32, i32
  }
}

</mosaic_0001>

<bundles_post_ra>
// kernel: tpu_custom_call.1
= control target key start
LH: loop header
LB: loop body
LE: loop exit
PB: predicated region body
PF: predicated region fallthrough
CT: control target
= control target key end

     0   :  { %9 = vsyncpa [#allocation3], 0  ;;  %s1387_s0 = inlined_call_operand.hbm [shape: f32[8,512], index: 0, kind: input, shape index: {}]   ;;  %s1388_s1 = inlined_call_operand.hbm [shape: f32[512,256], index: 1, kind: input, shape index: {}]   ;;  %s1389_s2 = inlined_call_operand.vmem [shape: f32[1,256], index: 2, kind: input, shape index: {}]   ;;  %s1390_s3 = inlined_call_operand.vmem [shape: f32[1,256], index: 3, kind: input, shape index: {}]   ;;  %s1391_s4 = inlined_call_operand.hbm [shape: f32[8,256], index: 4, kind: output, shape index: {}]  }
   0x1   :  { %10 = vsyncpa [#allocation6], 0 }
   0x2   :  { %12 = vsyncpa [#allocation6 + $0x1], 0 }
   0x3   :  { %13 = vsyncpa [#allocation4], 0 }
   0x4   :  { %15 = vsyncpa [#allocation4 + $0x1], 0  ;;  %s1079_s15 = smov 0   ;;  %s1081_s16 = smov 0  }
   0x5   :  { %s1083_s17 = smov 0   ;;  %s1085_s18 = smov 0  }
   0x6   :  { %s1087_s19 = smov 0   ;;  %s1089_s20 = smov 0  }
   0x7 LB: > { %s667_s21 = sadd.s32 4294967295, %s1046_s20   ;;  %s668_s22 = sadd.s32 4294967294, %s1046_s20   ;;  %s1046_s20 = sphi %s1089_s20, %s21_s20   ;;  %s1042_s19 = sphi %s1087_s19, %s1419_s19   ;;  %s1038_s18 = sphi %s1085_s18, %s1418_s18   ;;  %s1034_s17 = sphi %s1083_s17, %s1417_s17   ;;  %s1030_s16 = sphi %s1081_s16, %s1416_s16   ;;  %s1026_s15 = sphi %s1079_s15, %s1415_s15  }
   0x8   : > { %s66_s23 = sadd.s32 1, %s1034_s17  ;;  %p73_p0 = scmp.ne.s32.totalorder %s1034_s17, %s1030_s16 }
   0x9   : > { %p74_p1 = scmp.eq.s32.totalorder %s1046_s20, 0  ;;  %p79_p2 = scmp.ne.s32.totalorder %s1030_s16, %s1026_s15 }
   0xa   : > { %p1117_p3 = scmp.eq.s32.totalorder %s667_s21, 0  ;;  %p157_p4 = scmp.eq.s32.totalorder %s667_s21, 1 }
   0xb   : > { %p1121_p5 = por %p74_p1, %p73_p0  ;;  %p163_p6 = scmp.eq.s32.totalorder %s668_s22, 1 }
   0xc   : > { %s1398_s24 = scalar_select %p1117_p3, 1, 0 }
   0xd   : > { %p1127_p7 = por %p1117_p3, %p79_p2  ;;  %p1131_p8 = por %p157_p4, %p73_p0 }
   0xe   : > { %p1135_p9 = por %p163_p6, %p79_p2  ;;  %p669_p10 = scmp.ge.s32.totalorder %s1046_s20, 1 }
   0xf   : > { %s1400_s26 = scalar_select %p1127_p7, 1, 0 }
  0x10   : > { %s1401_s27 = scalar_select %p1131_p8, 1, 0 }
  0x11   : > { %s1402_s28 = scalar_select %p1135_p9, 1, 0 }
  0x12   : > { %p170_p11 = scmp.lt.s32.totalorder %s1046_s20, 3  ;;  %s1048_s30 = smov [#allocation2]  }
  0x13   : > { %s186_s5 = sshll.u32 %s1048_s30, 4  ;;  %p839_p1 = scmp.lt.s32.totalorder %s1046_s20, 2  ;;  %s187_s5 = int_to_ptr.vmem [resolvable:$true] %s186_s5 }
  0x14   : > { %p1142_p13 = pnand %p669_p10, %p170_p11  ;;  %s30_s8 = sadd.s32 1, %s1042_s19 }
  0x15   : > { %p1151_p4 = pnand %p839_p1, %p1121_p5  ;;  %p1162_p6 = scmp.ge.s32.totalorder %s30_s8, 2 }
  0x16   : > { %s1403_s29 = scalar_select %p1142_p13, 1, 0 }
  0x17   : > { %p826_p0 = pneg %p1142_p13  ;;  %s197_s10 = sand.u32 1, %s1034_s17  }
  0x18   : > { %s1404_s6 = scalar_select %p1151_p4, 1, 0 }
  0x19   : > { %p1157_p2 = pnand %p826_p0, %p1117_p3  ;;  %s902_s13 = scalar_lea.hbm %s1387_s0, 512 }
  0x1a   : > { %s1406_s9 = scalar_select %p1162_p6, 1, 0 }
  0x1b   : > { %p903_p5 = scmp.ne.s32.totalorder %s1387_s0, %s902_s13  ;;  %p904_p10 = pneg %p1157_p2 }
  0x1c   : > { %p909_p0 = scmp.lt.u32.totalorder %s902_s13, %s1387_s0 }
  0x1d   : > { %p905_p11 = pnand %p904_p10, %p903_p5 }
  0x1f   : > { %p906_p1 = pneg %p905_p11 }
  0x21   : > { %p911_p12 = pnand %p909_p0, %p906_p1 }
  0x23   : > { %914 = shalt.err (!%p911_p12)
}
  0x24   : > { %s915_s30 = scalar_lea.vmem %s187_s5, 512  ;;  %p923_p3 = scmp.lt.s32.totalorder %s187_s5, %s187_s5 }
  0x25   : > { %p916_p9 = scmp.ne.s32.totalorder %s187_s5, %s915_s30  ;;  %p924_p13 = scmp.lt.s32.totalorder %s915_s30, %s915_s30 }
  0x27   : > { %p918_p8 = pnand %p916_p9, %p904_p10  ;;  %p925_p4 = por %p924_p13, %p923_p3 }
  0x29   : > { %p919_p7 = pneg %p918_p8 }
  0x2b   : > { %p926_p6 = pnand %p925_p4, %p919_p7 }
  0x2d   : > { %929 = shalt.err (!%p926_p6)
}
  0x2e   : > { %829 = dma.hbm_to_vmem [thread:$0]  (!%p1157_p2), %s1387_s0, 512, %s187_s5, [#allocation3]  }
  0x2f   : > { %p1407_p9 = scmp.ne.s32.totalorder %s1406_s9, 0  ;;  %s672_s13 = sshll.u32 %s197_s10, 9 }
  0x30   : > { %s673_s21 = sshll.u32 %s1042_s19, 7  ;;  %s201_s30 = scalar_lea.vmem [#allocation5], %s672_s13 }
  0x31   : > { %s1421_s8 = smov (%p1407_p9, %s30_s8), 0  ;;  %s1193_s25 = scalar_lea.hbm %s1388_s1, %s673_s21 }
  0x32   : > { %s63_s14 = ssub.s32 %s1042_s19, %s1421_s8  ;;  %s207_s11 = sshll.u32 %s201_s30, 4  ;;  %s1200_s11 = int_to_ptr.vmem [resolvable:$true] %s207_s11 }
  0x33   : > { %p64_p3 = scmp.eq.s32.totalorder %s63_s14, 0  ;;  %s1202_s9 = scalar_lea.sflag [#allocation6], %s197_s10 }
  0x34   : > { %s930_s12 = scalar_lea.hbm %s1193_s25, 8192  ;;  %p1408_p8 = scmp.ne.s32.totalorder %s1404_s6, 0 }
  0x35   : > { %s1198_s5 = scalar_select %p64_p3, %s1034_s17, %s66_s23  }
  0x36   : > { %p931_p7 = scmp.ne.s32.totalorder %s1193_s25, %s930_s12  ;;  %p932_p12 = pneg %p1408_p8 }
  0x37   : > { %s935_s13 = scalar_lea.hbm %s1388_s1, 16384  ;;  %p936_p2 = scmp.lt.u32.totalorder %s1193_s25, %s1388_s1 }
  0x38   : > { %p933_p13 = pnand %p932_p12, %p931_p7  ;;  %p937_p6 = scmp.lt.u32.totalorder %s935_s13, %s930_s12 }
  0x39   : > { %p939_p10 = scmp.lt.u32.totalorder %s930_s12, %s1193_s25 }
  0x3a   : > { %p934_p4 = pneg %p933_p13  ;;  %p938_p5 = por %p937_p6, %p936_p2 }
  0x3c   : > { %p940_p11 = por %p939_p10, %p938_p5 }
  0x3e   : > { %p941_p1 = pnand %p940_p11, %p934_p4 }
  0x40   : > { %944 = shalt.err (!%p941_p1)
}
  0x41   : > { %s945_s23 = scalar_lea.vmem %s1200_s11, 8192  ;;  %s1049_s10 = smov [#allocation5]  }
  0x42   : > { %p946_p0 = scmp.ne.s32.totalorder %s1200_s11, %s945_s23  ;;  %s950_s30 = sshll.u32 %s1049_s10, 4  ;;  %s951_s30 = int_to_ptr.vmem [resolvable:$false] %s950_s30 }
  0x43   : > { %s952_s14 = scalar_lea.vmem %s951_s30, 16384  ;;  %p953_p7 = scmp.lt.s32.totalorder %s1200_s11, %s951_s30 }
  0x44   : > { %p948_p9 = pnand %p946_p0, %p932_p12  ;;  %p954_p13 = scmp.lt.s32.totalorder %s952_s14, %s945_s23 }
  0x46   : > { %p949_p3 = pneg %p948_p9  ;;  %p955_p2 = por %p954_p13, %p953_p7 }
  0x48   : > { %p956_p6 = pnand %p955_p2, %p949_p3 }
  0x4a   : > { %959 = shalt.err (!%p956_p6)
}
  0x4b   : > { %s1050_s12 = smov 256   ;;  %s1051_s21 = smov 128  }
  0x4c   : > { %s1052_s13 = smov 8   ;;  %p1409_p12 = scmp.ne.s32.totalorder %s1403_s29, 0 }
  0x4d   : > { %833 = dma.hbm_to_vmem [thread:$0]  (!%p1408_p8), %s1193_s25, 8192, %s1200_s11, %s1202_s9, %s1050_s12, %s1051_s21, %s1052_s13  }
  0x4e   : > { %231 = sbr.rel (%p1409_p12) target bundleno = 376 (0x178), region = 36  ;;  %p1410_p4 = scmp.ne.s32.totalorder (!%p1409_p12), %s1398_s24, 0 }
  0x55   : > { %1013 = dma.done.wait (%p1410_p4), [#allocation3], 512  }
  0x56   : > { %1015 = vsyncadd (%p1410_p4), [#allocation3], 4294966784  ;;  %s1237_s7 = sand.u32 1, %s1030_s16   ;;  %p1411_p8 = scmp.ne.s32.totalorder %s1400_s26, 0 }
  0x57   : > { %s676_s22 = sshll.u32 %s1237_s7, 9  ;;  %s238_s23 = scalar_lea.sflag [#allocation6], %s1237_s7 }
  0x58   : > { %s1241_s10 = scalar_lea.vmem [#allocation5], %s676_s22 }
  0x59   : > { %1017 = dma.done.wait (%p1411_p8), %s238_s23, 8192  }
  0x5a   : > { %1019 = vsyncadd (%p1411_p8), %s238_s23, 4294959104  ;;  %v334_v0 = vld [vmem:[%s1241_s10 + $0x80] sm:$0xff]  ;;  %v335_v1 = vld [vmem:[%s1241_s10 + $0x88] sm:$0xff]  ;;  %p272_p5 = scmp.lt.s32.totalorder %s1038_s18, 1  ;;  %s677_s26 = sshll.u32 %s1237_s7, 3 }
  0x5b   : > { %v366_v2 = vld [vmem:[%s1241_s10 + $0x180] sm:$0xff]  ;;  %v754_v3 = vpack.c.bf16 %v335_v1, %v334_v0  ;;  %v367_v4 = vld [vmem:[%s1241_s10 + $0x188] sm:$0xff]  ;;  %v336_v11 = vld [vmem:[%s1241_s10 + $0x90] sm:$0xff]  ;;  %s681_s14 = sshll.u32 %s1038_s18, 7  ;;  %s271_s12 = scalar_lea.vmem [#allocation7], %s677_s26 }
  0x5c   : > { %v318_v5 = vld [vmem:[%s1241_s10] sm:$0xff]  ;;  %v319_v6 = vld [vmem:[%s1241_s10 + $0x8] sm:$0xff]  ;;  %v786_v7 = vpack.c.bf16 %v367_v4, %v366_v2  ;;  %v337_v13 = vld [vmem:[%s1241_s10 + $0x98] sm:$0xff]  ;;  %s273_s24 = scalar_select %p272_p5, %s1038_s18, 1 }
  0x5d   : > { %v756_v8 = vpack.c.bf16 %v319_v6, %v318_v5  ;;  %v350_v9 = vld [vmem:[%s1241_s10 + $0x100] sm:$0xff]  ;;  %v351_v10 = vld [vmem:[%s1241_s10 + $0x108] sm:$0xff]  ;;  %755 = vmatprep.subr.bf16.mxu0 %v754_v3  ;;  %v368_v14 = vld [vmem:[%s1241_s10 + $0x190] sm:$0xff]  ;;  %v758_v16 = vpack.c.bf16 %v337_v13, %v336_v11  ;;  %s555_s21 = sshll.u32 %s271_s12, 4  ;;  %s1338_s23 = scalar_lea.hbm %s1391_s4, %s681_s14  ;;  %s1340_s21 = int_to_ptr.vmem [resolvable:$true] %s555_s21 }
  0x5e   : > { %v788_v12 = vpack.c.bf16 %v351_v10, %v350_v9  ;;  %v369_v15 = vld [vmem:[%s1241_s10 + $0x198] sm:$0xff]  ;;  %787 = vmatprep.subr.bf16.mxu1 %v786_v7  ;;  %v320_v18 = vld [vmem:[%s1241_s10 + $0x10] sm:$0xff]  ;;  %v338_v23 = vld [vmem:[%s1241_s10 + $0xa0] sm:$0xff]  ;;  %s274_s25 = scalar_lea.vmem %s1389_s2, %s273_s24  ;;  %s277_s30 = scalar_lea.vmem %s1390_s3, %s273_s24 }
  0x5f   : > { %757 = vmatpush3.bf16.msra.mxu0 %v756_v8  ;;  %v790_v17 = vpack.c.bf16 %v369_v15, %v368_v14  ;;  %v321_v19 = vld [vmem:[%s1241_s10 + $0x18] sm:$0xff]  ;;  %v352_v20 = vld [vmem:[%s1241_s10 + $0x110] sm:$0xff]  ;;  %v339_v24 = vld [vmem:[%s1241_s10 + $0xa8] sm:$0xff]  ;;  %s960_s24 = scalar_lea.vmem %s1340_s21, 128  ;;  %p1412_p11 = scmp.ne.s32.totalorder %s1401_s27, 0 }
  0x60   : > { %789 = vmatpush3.bf16.msra.mxu1 %v788_v12  ;;  %v760_v21 = vpack.c.bf16 %v321_v19, %v320_v18  ;;  %v353_v22 = vld [vmem:[%s1241_s10 + $0x118] sm:$0xff]  ;;  %759 = vmatprep.subr.bf16.mxu0 %v758_v16  ;;  %v762_v26 = vpack.c.bf16 %v339_v24, %v338_v23  ;;  %v370_v27 = vld [vmem:[%s1241_s10 + $0x1a0] sm:$0xff]  ;;  %v371_v28 = vld [vmem:[%s1241_s10 + $0x1a8] sm:$0xff]  ;;  %p961_p10 = scmp.ne.s32.totalorder %s1340_s21, %s960_s24  ;;  %s1053_s18 = smov [#allocation7]  }
  0x61   : > { %791 = vmatprep.subr.bf16.mxu1 %v790_v17  ;;  %v792_v25 = vpack.c.bf16 %v353_v22, %v352_v20  ;;  %v322_v29 = vld [vmem:[%s1241_s10 + $0x20] sm:$0xff]  ;;  %v794_v30 = vpack.c.bf16 %v371_v28, %v370_v27  ;;  %v323_v31 = vld [vmem:[%s1241_s10 + $0x28] sm:$0xff]  ;;  %v340_v35 = vld [vmem:[%s1241_s10 + $0xb0] sm:$0xff]  ;;  %s964_s26 = sshll.u32 %s1053_s18, 4  ;;  %s965_s26 = int_to_ptr.vmem [resolvable:$false] %s964_s26 }
  0x62   : > { %v354_v32 = vld [vmem:[%s1241_s10 + $0x120] sm:$0xff]  ;;  %v355_v33 = vld [vmem:[%s1241_s10 + $0x128] sm:$0xff]  ;;  %v764_v34 = vpack.c.bf16 %v323_v31, %v322_v29  ;;  %v341_v36 = vld [vmem:[%s1241_s10 + $0xb8] sm:$0xff]  ;;  %p962_p1 = pnand %p961_p10, %p1412_p11  ;;  %s966_s29 = scalar_lea.vmem %s965_s26, 256 }
  0x63   : > { %761 = vmatpush3.bf16.msra.mxu0 %v760_v21  ;;  %v372_v37 = vld [vmem:[%s1241_s10 + $0x1b0] sm:$0xff]  ;;  %v796_v38 = vpack.c.bf16 %v355_v33, %v354_v32  ;;  %v766_v39 = vpack.c.bf16 %v341_v36, %v340_v35  ;;  %v373_v40 = vld [vmem:[%s1241_s10 + $0x1b8] sm:$0xff]  ;;  %v342_v46 = vld [vmem:[%s1241_s10 + $0xc0] sm:$0xff]  ;;  %p967_p9 = scmp.lt.s32.totalorder %s1340_s21, %s965_s26  ;;  %p968_p3 = scmp.lt.s32.totalorder %s966_s29, %s960_s24 }
  0x64   : > { %793 = vmatpush3.bf16.msra.mxu1 %v792_v25  ;;  %763 = vmatprep.subr.bf16.mxu0 %v762_v26  ;;  %v324_v41 = vld [vmem:[%s1241_s10 + $0x30] sm:$0xff]  ;;  %v325_v42 = vld [vmem:[%s1241_s10 + $0x38] sm:$0xff]  ;;  %v798_v43 = vpack.c.bf16 %v373_v40, %v372_v37  ;;  %v343_v47 = vld [vmem:[%s1241_s10 + $0xc8] sm:$0xff]  ;;  %p963_p0 = pneg %p962_p1 }
  0x65   : > { %795 = vmatprep.subr.bf16.mxu1 %v794_v30  ;;  %v356_v44 = vld [vmem:[%s1241_s10 + $0x130] sm:$0xff]  ;;  %v357_v45 = vld [vmem:[%s1241_s10 + $0x138] sm:$0xff]  ;;  %v374_v48 = vld [vmem:[%s1241_s10 + $0x1c0] sm:$0xff]  ;;  %v768_v50 = vpack.c.bf16 %v325_v42, %v324_v41  ;;  %v770_v52 = vpack.c.bf16 %v343_v47, %v342_v46  ;;  %p969_p7 = por %p968_p3, %p967_p9 }
  0x66   : > { %v375_v49 = vld [vmem:[%s1241_s10 + $0x1c8] sm:$0xff]  ;;  %v800_v51 = vpack.c.bf16 %v357_v45, %v356_v44  ;;  %v326_v53 = vld [vmem:[%s1241_s10 + $0x40] sm:$0xff]  ;;  %v344_v58 = vld [vmem:[%s1241_s10 + $0xd0] sm:$0xff] }
  0x67   : > { %765 = vmatpush3.bf16.msra.mxu0 %v764_v34  ;;  %v327_v54 = vld [vmem:[%s1241_s10 + $0x48] sm:$0xff]  ;;  %v358_v55 = vld [vmem:[%s1241_s10 + $0x140] sm:$0xff]  ;;  %v802_v56 = vpack.c.bf16 %v375_v49, %v374_v48  ;;  %v345_v59 = vld [vmem:[%s1241_s10 + $0xd8] sm:$0xff]  ;;  %p970_p13 = pnand %p969_p7, %p963_p0 }
  0x68   : > { %797 = vmatpush3.bf16.msra.mxu1 %v796_v38  ;;  %767 = vmatprep.subr.bf16.mxu0 %v766_v39  ;;  %v359_v57 = vld [vmem:[%s1241_s10 + $0x148] sm:$0xff]  ;;  %v376_v60 = vld [vmem:[%s1241_s10 + $0x1d0] sm:$0xff]  ;;  %v377_v61 = vld [vmem:[%s1241_s10 + $0x1d8] sm:$0xff]  ;;  %v772_v62 = vpack.c.bf16 %v327_v54, %v326_v53  ;;  %v774_v0 = vpack.c.bf16 %v345_v59, %v344_v58 }
  0x69   : > { %799 = vmatprep.subr.bf16.mxu1 %v798_v43  ;;  %v804_v63 = vpack.c.bf16 %v359_v57, %v358_v55  ;;  %v328_v1 = vld [vmem:[%s1241_s10 + $0x50] sm:$0xff]  ;;  %v329_v2 = vld [vmem:[%s1241_s10 + $0x58] sm:$0xff]  ;;  %v806_v4 = vpack.c.bf16 %v377_v61, %v376_v60  ;;  %v346_v6 = vld [vmem:[%s1241_s10 + $0xe0] sm:$0xff] }
  0x6a   : > { %v360_v3 = vld [vmem:[%s1241_s10 + $0x150] sm:$0xff]  ;;  %v361_v5 = vld [vmem:[%s1241_s10 + $0x158] sm:$0xff]  ;;  %v347_v7 = vld [vmem:[%s1241_s10 + $0xe8] sm:$0xff]  ;;  %v776_v11 = vpack.c.bf16 %v329_v2, %v328_v1 }
  0x6b   : > { %769 = vmatpush3.bf16.msra.mxu0 %v768_v50  ;;  %v378_v8 = vld [vmem:[%s1241_s10 + $0x1e0] sm:$0xff]  ;;  %v379_v9 = vld [vmem:[%s1241_s10 + $0x1e8] sm:$0xff]  ;;  %v808_v15 = vpack.c.bf16 %v361_v5, %v360_v3  ;;  %v778_v16 = vpack.c.bf16 %v347_v7, %v346_v6  ;;  %v348_v17 = vld [vmem:[%s1241_s10 + $0xf0] sm:$0xff] }
  0x6c   : > { %801 = vmatpush3.bf16.msra.mxu1 %v800_v51  ;;  %771 = vmatprep.subr.bf16.mxu0 %v770_v52  ;;  %v330_v10 = vld [vmem:[%s1241_s10 + $0x60] sm:$0xff]  ;;  %v331_v12 = vld [vmem:[%s1241_s10 + $0x68] sm:$0xff]  ;;  %v1306_v19 = vld [vmem:[#allocation2 + $0x18] sm:$0xff]  ;;  %v810_v20 = vpack.c.bf16 %v379_v9, %v378_v8 }
  0x6d   : > { %803 = vmatprep.subr.bf16.mxu1 %v802_v56  ;;  %v362_v13 = vld [vmem:[%s1241_s10 + $0x160] sm:$0xff]  ;;  %v363_v14 = vld [vmem:[%s1241_s10 + $0x168] sm:$0xff]  ;;  %v349_v21 = vld [vmem:[%s1241_s10 + $0xf8] sm:$0xff]  ;;  %v285_v23 = vmul.f32 %v1306_v19, %v1306_v19  ;;  %v780_v30 = vpack.c.bf16 %v331_v12, %v330_v10 }
  0x6e   : > { %v1304_v18 = vld [vmem:[#allocation2 + $0x8] sm:$0xff]  ;;  %v278_v24 = vld [vmem:[#allocation2] sm:$0xff]  ;;  %v280_v25 = vld [vmem:[#allocation2 + $0x10] sm:$0xff]  ;;  %v812_v31 = vpack.c.bf16 %v363_v14, %v362_v13  ;;  %v782_v34 = vpack.c.bf16 %v349_v21, %v348_v17 }
  0x6f   : > { %773 = vmatpush3.bf16.msra.mxu0 %v772_v62  ;;  %v283_v22 = vmul.f32 %v1304_v18, %v1304_v18  ;;  %v380_v26 = vld [vmem:[%s1241_s10 + $0x1f0] sm:$0xff]  ;;  %v381_v27 = vld [vmem:[%s1241_s10 + $0x1f8] sm:$0xff]  ;;  %v282_v28 = vmul.f32 %v278_v24, %v278_v24  ;;  %v284_v29 = vmul.f32 %v280_v25, %v280_v25  ;;  %v289_v33 = vmul.f32 %v285_v23, %v1306_v19  ;;  %v678_v14 = vld [vmem:[%s274_s25] ss:$0 sm:$0xff] }
  0x70   : > { %805 = vmatpush3.bf16.msra.mxu1 %v804_v63  ;;  %775 = vmatprep.subr.bf16.mxu0 %v774_v0  ;;  %v332_v35 = vld [vmem:[%s1241_s10 + $0x70] sm:$0xff]  ;;  %v333_v36 = vld [vmem:[%s1241_s10 + $0x78] sm:$0xff]  ;;  %v814_v39 = vpack.c.bf16 %v381_v27, %v380_v26 }
  0x71   : > { %807 = vmatprep.subr.bf16.mxu1 %v806_v4  ;;  %v287_v32 = vmul.f32 %v283_v22, %v1304_v18  ;;  %v286_v37 = vmul.f32 %v282_v28, %v278_v24  ;;  %v288_v38 = vmul.f32 %v284_v29, %v280_v25  ;;  %v364_v40 = vld [vmem:[%s1241_s10 + $0x170] sm:$0xff]  ;;  %v365_v41 = vld [vmem:[%s1241_s10 + $0x178] sm:$0xff]  ;;  %v293_v43 = vmul.f32 0.044715, %v289_v33  ;;  %s540_s10 = scalar_lea.sflag [#allocation4], %s1237_s7 }
  0x72   : > { %v784_v46 = vpack.c.bf16 %v333_v36, %v332_v35  ;;  %v816_v49 = vpack.c.bf16 %v365_v41, %v364_v40 }
  0x73   : > { %777 = vmatpush3.bf16.msra.mxu0 %v776_v11  ;;  %v291_v42 = vmul.f32 0.044715, %v287_v32  ;;  %v290_v44 = vmul.f32 0.044715, %v286_v37  ;;  %v292_v45 = vmul.f32 0.044715, %v288_v38  ;;  %v297_v48 = vadd.f32 %v293_v43, %v1306_v19 }
  0x74   : > { %809 = vmatpush3.bf16.msra.mxu1 %v808_v15  ;;  %779 = vmatprep.subr.bf16.mxu0 %v778_v16  ;;  %v679_v16 = vld [vmem:[%s277_s30] ss:$0 sm:$0xff] }
  0x75   : > { %811 = vmatprep.subr.bf16.mxu1 %v810_v20  ;;  %v295_v47 = vadd.f32 %v291_v42, %v1304_v18  ;;  %v294_v50 = vadd.f32 %v290_v44, %v278_v24  ;;  %v296_v51 = vadd.f32 %v292_v45, %v280_v25  ;;  %v301_v53 = vmul.f32 0.7978846, %v297_v48 }
  0x77   : > { %781 = vmatpush3.bf16.msra.mxu0 %v780_v30  ;;  %v299_v52 = vmul.f32 0.7978846, %v295_v47  ;;  %v298_v54 = vmul.f32 0.7978846, %v294_v50  ;;  %v300_v55 = vmul.f32 0.7978846, %v296_v51 }
  0x78   : > { %813 = vmatpush3.bf16.msra.mxu1 %v812_v31  ;;  %783 = vmatprep.subr.bf16.mxu0 %v782_v34 }
  0x79   : > { %815 = vmatprep.subr.bf16.mxu1 %v814_v39  ;;  %894 = vtanh.f32 %v299_v52 }
  0x7a   : > { %896 = vtanh.f32 %v301_v53 }
  0x7b   : > { %785 = vmatpush3.bf16.msra.mxu0 %v784_v46  ;;  %898 = vtanh.f32 %v298_v54 }
  0x7c   : > { %817 = vmatpush3.bf16.msra.mxu1 %v816_v49  ;;  %900 = vtanh.f32 %v300_v55 }
  0x83   : > { %v895_v56 = vpop.eup %894 }
  0x84   : > { %v897_v57 = vpop.eup %896  ;;  %v307_v58 = vadd.f32 1.0, %v895_v56 }
  0x85   : > { %v899_v59 = vpop.eup %898  ;;  %v309_v60 = vadd.f32 1.0, %v897_v57 }
  0x86   : > { %v901_v61 = vpop.eup %900  ;;  %v311_v62 = vmul.f32 0.5, %v307_v58  ;;  %v306_v63 = vadd.f32 1.0, %v899_v59 }
  0x87   : > { %v313_v0 = vmul.f32 0.5, %v309_v60  ;;  %v308_v1 = vadd.f32 1.0, %v901_v61 }
  0x88   : > { %v315_v2 = vmul.f32 %v311_v62, %v1304_v18  ;;  %v310_v3 = vmul.f32 0.5, %v306_v63 }
  0x89   : > { %v317_v4 = vmul.f32 %v313_v0, %v1306_v19  ;;  %v312_v5 = vmul.f32 0.5, %v308_v1 }
  0x8a   : > { %446 = vmatprep.mubr.f32.mxu0 %v315_v2  ;;  %v314_v6 = vmul.f32 %v310_v3, %v278_v24 }
  0x8b   : > { %516 = vmatprep.mubr.f32.mxu1 %v317_v4  ;;  %v316_v7 = vmul.f32 %v312_v5, %v280_v25 }
  0x8c   : > { %447 = vmatmul.mubr.f32.vlgmr.msra.gmra.mrb[0].mxu0 %v314_v6 }
  0x8d   : > { %517 = vmatmul.mubr.f32.vlgmr.msra.gmra.mrb[0].mxu1 %v316_v7 }
 0x15f   : > { %v716_v8 = vpop.f32.mrb[0].mxu0 }
 0x160   : > { %v751_v9 = vpop.f32.mrb[0].mxu1  ;;  %v717_v10 = vpop.f32.mrb[1].mxu0 }
 0x161   : > { %v718_v11 = vadd.f32 %v717_v10, %v716_v8  ;;  %v752_v12 = vpop.f32.mrb[1].mxu1 }
 0x162   : > { %v753_v13 = vadd.f32 %v752_v12, %v751_v9 }
 0x164   : > { %v519_v15 = vadd.f32 %v753_v13, %v718_v11 }
 0x166   : > { %v529_v17 = vmul.f32 %v678_v14, %v519_v15 }
 0x168   : > { %v537_v18 = vadd.f32 %v679_v16, %v529_v17 }
 0x16a   : > { %538 = vst [vmem:[%s271_s12] sm:$0xff] %v537_v18 }
 0x16b   : > { %973 = shalt.err (!%p970_p13)
}
 0x16c   : > { %s974_s7 = scalar_lea.hbm %s1338_s23, 128  ;;  %s978_s11 = scalar_lea.hbm %s1391_s4, 256 }
 0x16d   : > { %p975_p2 = scmp.ne.s32.totalorder %s1338_s23, %s974_s7  ;;  %p979_p4 = scmp.lt.u32.totalorder %s1338_s23, %s1391_s4 }
 0x16e   : > { %p980_p8 = scmp.lt.u32.totalorder %s978_s11, %s974_s7  ;;  %p982_p10 = scmp.lt.u32.totalorder %s974_s7, %s1338_s23 }
 0x16f   : > { %p976_p6 = pnand %p975_p2, %p1412_p11 }
 0x170   : > { %p981_p5 = por %p980_p8, %p979_p4 }
 0x171   : > { %p977_p12 = pneg %p976_p6 }
 0x172   : > { %p983_p1 = por %p982_p10, %p981_p5 }
 0x174   : > { %p984_p0 = pnand %p983_p1, %p977_p12 }
 0x176   : > { %987 = shalt.err (!%p984_p0)
}
 0x177   : > { %824 = dma.vmem_to_hbm [thread:$0]  (%p1412_p11), %s1340_s21, 128, %s1338_s23, %s540_s10  }
 0x178 PF: > { %s567_s14 = sand.u32 1, %s1026_s15   ;;  %p1413_p9 = scmp.ne.s32.totalorder %s1402_s28, 0 }
 0x179   : > { %p1414_p3 = scmp.ge.s32.totalorder %s1046_s20, 2  ;;  %s568_s12 = scalar_lea.sflag [#allocation4], %s567_s14 }
 0x17b   : > { %p835_p7 = pnand %p1414_p3, %p1413_p9 }
 0x17d   : > { %1021 = dma.done.wait (!%p835_p7), %s568_s12, 128  }
 0x17e   : > { %1023 = vsyncadd (!%p835_p7), %s568_s12, 4294967168  ;;  %s21_s20 = sadd.s32 1, %s1046_s20   ;;  %s1415_s15 = smov %s1030_s16 }
 0x17f   : > { %p18_p13 = scmp.ge.s32.totalorder %s21_s20, 4   ;;  %s1416_s16 = smov %s1034_s17 }
 0x180   : > { %s1417_s17 = smov %s1198_s5  ;;  %s1418_s18 = smov %s1042_s19 }
 0x181   : > { %s1419_s19 = smov %s1421_s8  ;;  %20 = sbr.rel (!%p18_p13) target bundleno = 7 (0x7), region = 93 }
 0x188   :  { %573 = vsyncpa [#allocation3], 1 }
 0x189   :  { %575 = vsyncpa [#allocation3 + $0x1], 1 }
 0x18a   :  { %576 = vsyncpa [#allocation6], 1 }
 0x18b   :  { %578 = vsyncpa [#allocation6 + $0x1], 1 }
 0x18c   :  { %579 = vsyncpa [#allocation4], 1 }
 0x18d   :  { %581 = vsyncpa [#allocation4 + $0x1], 1 }

</bundles_post_ra>
